<compile_context>
chip_gen: v7x
topology: tpu7x:2x2x1
jax: 0.10.0
libtpu: 0.0.40
codegen_flags: <defaults>
</compile_context>

<pallas_src>
import functools

import jax
import jax.numpy as jnp
from jax import lax
from jax.experimental import pallas as pl
from jax.experimental.pallas import tpu as pltpu


def _round_up(x, m):
    return (x + m - 1) // m * m


def _vmem_capacity_bytes():
    try:
        info = pltpu.get_tpu_info()
        cap = getattr(info, "vmem_capacity_bytes", None)
        if cap:
            return int(cap)
    except Exception:
        pass
    return 64 * 1024 * 1024  # conservative default (v7x per-core VMEM)


# ----------------------------------------------------------------------------
# One (layer, row-tile) step: out = maybe_relu((A_tile @ H_in) @ W + b).
# All matmul operands bf16, accumulation f32. Writes tile rows of H_out.
# ----------------------------------------------------------------------------
def _layer_tile(a_tile, h_in_ref, h_out_ref, w_ref, b_ref, apply_relu,
                row0, tile_m):
    h_cur = h_in_ref[...]                                    # (n_pad, c_pad) bf16
    ah = jnp.dot(a_tile, h_cur, preferred_element_type=jnp.float32)
    out = jnp.dot(ah.astype(jnp.bfloat16), w_ref[0],
                  preferred_element_type=jnp.float32)
    out = out + b_ref[0]                                     # (1, c_pad) f32
    out = jnp.where(apply_relu, jnp.maximum(out, 0.0), out)
    h_out_ref[pl.ds(row0, tile_m), :] = out.astype(h_out_ref.dtype)


# ----------------------------------------------------------------------------
# Fused kernel, grid = (num_layers, num_row_tiles).
#   a_in   : resident -> raw HBM ref (n_pad, n_pad); streamed -> (tile_m, n_pad)
#   x0_hbm : raw HBM ref (n_pad, c_pad) bf16 (seeds the activation once)
#   w_ref  : (1, c_pad, c_pad) bf16 layer weight
#   b_ref  : (1, 1, c_pad)     f32  layer bias
#   o_hbm  : raw HBM output ref (n_pad, c_pad) bf16 (written by one final DMA)
#   scratch: [a_vmem?] h0 h1 sems
# ----------------------------------------------------------------------------
def fused_gcn_kernel(a_in, x0_hbm, w_ref, b_ref, o_hbm, *scratch,
                     num_layers, tile_m, a_resident):
    if a_resident:
        a_vmem, h0, h1, sems = scratch
    else:
        a_vmem = None
        h0, h1, sems = scratch

    l = pl.program_id(0)
    i = pl.program_id(1)
    n_tiles = pl.num_programs(1)

    # One-shot seeding at the very first grid step: x0 -> h0 (and A -> VMEM).
    @pl.when(jnp.logical_and(l == 0, i == 0))
    def _seed():
        cp_x = pltpu.make_async_copy(x0_hbm, h0, sems.at[0])
        cp_x.start()
        if a_resident:
            cp_a = pltpu.make_async_copy(a_in, a_vmem, sems.at[1])
            cp_a.start()
            cp_a.wait()
        cp_x.wait()

    row0 = pl.multiple_of(i * tile_m, tile_m)
    if a_resident:
        a_tile = a_vmem[pl.ds(row0, tile_m), :]              # cached across layers
    else:
        a_tile = a_in[...]                                   # streamed row tile
    apply_relu = l < num_layers - 1

    # Ping-pong between two statically-indexed scratch refs (no dynamic
    # leading-index slab load).
    @pl.when(lax.rem(l, 2) == 0)
    def _even():
        _layer_tile(a_tile, h0, h1, w_ref, b_ref, apply_relu, row0, tile_m)

    @pl.when(lax.rem(l, 2) == 1)
    def _odd():
        _layer_tile(a_tile, h1, h0, w_ref, b_ref, apply_relu, row0, tile_m)

    # Emit the output exactly once: DMA the finished activation slab to HBM.
    @pl.when(jnp.logical_and(l == num_layers - 1, i == n_tiles - 1))
    def _store():
        h_final = h1 if (num_layers % 2 == 1) else h0
        cp_o = pltpu.make_async_copy(h_final, o_hbm, sems.at[2])
        cp_o.start()
        cp_o.wait()


# ----------------------------------------------------------------------------
# Plain-JAX glue: dense normalized adjacency from edge_index (GCNConv norm).
# ----------------------------------------------------------------------------
def normalized_adjacency(edge_index, num_nodes):
    """A_hat[dst, src] = deg(dst)^-1/2 * deg(src)^-1/2, with self-loops."""
    src = edge_index[0]
    dst = edge_index[1]
    loop = jnp.arange(num_nodes, dtype=edge_index.dtype)
    src = jnp.concatenate([src, loop])
    dst = jnp.concatenate([dst, loop])
    a = jnp.zeros((num_nodes, num_nodes), jnp.float32).at[dst, src].add(1.0)
    deg = a.sum(axis=1)
    d_inv_sqrt = jnp.where(deg > 0, lax.rsqrt(deg), 0.0)
    return a * d_inv_sqrt[:, None] * d_inv_sqrt[None, :]


# ----------------------------------------------------------------------------
# Host wrapper: pad to lane-dense shapes, pick tiling / residency from VMEM.
# ----------------------------------------------------------------------------
def gcn_forward(params, x, edge_index, *, compute_dtype=jnp.bfloat16):
    n, c_in = x.shape
    num_layers = len(params)
    dims = [c_in] + [w.shape[1] for (w, _) in params]
    c_out = dims[-1]

    # TODO(synk): per-layer padded feature widths (saves MXU work and VMEM when
    # in_channels >> hidden); a single lane-dense width is used here.
    c_pad = _round_up(max(dims), 128)

    vmem_cap = _vmem_capacity_bytes()
    budget = int(vmem_cap * 0.70)

    # Prefer caching A_hat in VMEM across layers; within each mode prefer the
    # largest row tile (fewer grid steps, bigger contiguous DMAs).
    chosen = None
    for a_resident in (True, False):
        for cand in (512, 256, 128):
            tile_m = min(cand, _round_up(n, 128))
            n_pad = _round_up(n, tile_m)
            h_bytes = 2 * n_pad * c_pad * 2                      # h0 + h1 (bf16)
            wb_bytes = 2 * (c_pad * c_pad * 2 + 8 * c_pad * 4)   # W/b dbl buffers
            a_bytes = (n_pad * n_pad * 2 if a_resident
                       else 2 * tile_m * n_pad * 2)
            total = h_bytes + wb_bytes + a_bytes
            if total <= budget:
                chosen = (tile_m, n_pad, a_resident, total)
                break
        if chosen is not None:
            break
    if chosen is None:
        raise ValueError("Graph too large for the VMEM-resident fused GCN.")
    tile_m, n_pad, a_resident, vmem_used = chosen
    n_tiles = n_pad // tile_m

    a_hat = normalized_adjacency(edge_index, n)
    # Invariant: padded columns of A are exactly zero, so padded node rows of H
    # (which pick up bias/relu garbage) never leak into real rows.
    a_pad = jnp.zeros((n_pad, n_pad), compute_dtype).at[:n, :n].set(
        a_hat.astype(compute_dtype))
    x_pad = jnp.zeros((n_pad, c_pad), compute_dtype).at[:n, :c_in].set(
        x.astype(compute_dtype))

    # bf16 weights (full-rate MXU), f32 bias (added after f32 accumulation).
    w_stack = jnp.zeros((num_layers, c_pad, c_pad), compute_dtype)
    b_stack = jnp.zeros((num_layers, 1, c_pad), jnp.float32)
    for li, (w, b) in enumerate(params):
        w_stack = w_stack.at[li, : w.shape[0], : w.shape[1]].set(
            w.astype(compute_dtype))
        b_stack = b_stack.at[li, 0, : b.shape[0]].set(b)

    if a_resident:
        a_spec = pl.BlockSpec(memory_space=pl.ANY)               # one manual DMA
        scratch = [pltpu.VMEM((n_pad, n_pad), compute_dtype)]
    else:
        a_spec = pl.BlockSpec((tile_m, n_pad), lambda l, i: (i, 0))
        scratch = []
    scratch += [pltpu.VMEM((n_pad, c_pad), compute_dtype),       # h0
                pltpu.VMEM((n_pad, c_pad), compute_dtype),       # h1
                pltpu.SemaphoreType.DMA((3,))]

    vmem_limit = int(min(max(int(vmem_used * 1.5) + (4 << 20), 32 << 20),
                         100 << 20, vmem_cap - (4 << 20)))

    itemsize = jnp.dtype(compute_dtype).itemsize
    a_passes = 1 if a_resident else num_layers
    flops = num_layers * (2 * n_pad * n_pad * c_pad + 2 * n_pad * c_pad * c_pad)
    bytes_accessed = (a_passes * n_pad * n_pad * itemsize
                      + n_pad * c_pad * itemsize                 # x0 seed
                      + num_layers * (c_pad * c_pad * itemsize + c_pad * 4)
                      + n_pad * c_pad * itemsize)                # final output

    kernel = functools.partial(fused_gcn_kernel, num_layers=num_layers,
                               tile_m=tile_m, a_resident=a_resident)

    out = pl.pallas_call(
        kernel,
        out_shape=jax.ShapeDtypeStruct((n_pad, c_pad), compute_dtype),
        grid_spec=pltpu.PrefetchScalarGridSpec(
            num_scalar_prefetch=0,
            grid=(num_layers, n_tiles),
            in_specs=[
                a_spec,
                pl.BlockSpec(memory_space=pl.ANY),               # x0 stays in HBM
                pl.BlockSpec((1, c_pad, c_pad), lambda l, i: (l, 0, 0)),
                pl.BlockSpec((1, 1, c_pad), lambda l, i: (l, 0, 0)),
            ],
            out_specs=pl.BlockSpec(memory_space=pl.ANY),         # manual final DMA
            scratch_shapes=scratch,
        ),
        compiler_params=pltpu.CompilerParams(
            # Both axes sequential: the layer axis carries the ping-pong
            # activation dependence and the row axis shares that scratch.
            # TODO(synk): v7x dual-TensorCore sharding of the row axis needs an
            # explicit cross-core activation exchange (core_map + barrier).
            dimension_semantics=("arbitrary", "arbitrary"),
            vmem_limit_bytes=vmem_limit,
        ),
        cost_estimate=pl.CostEstimate(
            flops=int(flops), transcendentals=0,
            bytes_accessed=int(bytes_accessed)),
    )(a_pad, x_pad, w_stack, b_stack)

    return out[:n, :c_out].astype(jnp.float32)


# ----------------------------------------------------------------------------
# Parameters (Glorot-uniform weights, zero bias) and a pure-JAX reference.
# ----------------------------------------------------------------------------
def init_gcn_params(key, in_channels, hidden_channels, out_channels,
                    num_layers):
    dims = [in_channels] + [hidden_channels] * (num_layers - 1) + [out_channels]
    params = []
    for li in range(num_layers):
        key, kw, _ = jax.random.split(key, 3)
        fan_in, fan_out = dims[li], dims[li + 1]
        scale = (6.0 / (fan_in + fan_out)) ** 0.5
        w = jax.random.uniform(kw, (fan_in, fan_out), jnp.float32, -scale, scale)
        b = jnp.zeros((fan_out,), jnp.float32)
        params.append((w, b))
    # TODO(synk): edge_predictor MLP is not used in forward(); not implemented.
    return params


def gcn_reference(params, x, edge_index):
    a_hat = normalized_adjacency(edge_index, x.shape[0])
    h = x
    for li, (w, b) in enumerate(params):
        h = a_hat @ (h @ w) + b
        if li < len(params) - 1:
            h = jnp.maximum(h, 0.0)
        # F.dropout(..., training=False) -> identity
    return h


# ----------------------------------------------------------------------------
if __name__ == "__main__":
    key = jax.random.PRNGKey(0)
    k_x, k_e, k_p = jax.random.split(key, 3)

    num_nodes = 16
    in_channels = 8
    hidden_channels = 32
    out_channels = 16
    num_layers = 5
    num_edges = 40

    x = jax.random.normal(k_x, (num_nodes, in_channels), jnp.float32)
    edge_index = jax.random.randint(k_e, (2, num_edges), 0, num_nodes, jnp.int32)

    params = init_gcn_params(k_p, in_channels, hidden_channels, out_channels,
                             num_layers)

    out = gcn_forward(params, x, edge_index)
    out = jax.block_until_ready(out)
    assert out.shape == (num_nodes, out_channels)

    # Loose tolerance: A_hat / activations / weights are bf16 in the kernel.
    ref = gcn_reference(params, x, edge_index)
    max_err = float(jnp.max(jnp.abs(out - ref)))
    assert jnp.allclose(out, ref, rtol=5e-2, atol=7e-2), max_err

    print("KERNEL_OK")
</pallas_src>

<mosaic_0001>
module attributes {stable_mosaic.version = 11 : i64} {
  func.func @fused_gcn_kernel(%arg0: i32, %arg1: i32, %arg2: memref<128x128xbf16, #tpu.memory_space<any>>, %arg3: memref<128x128xbf16, #tpu.memory_space<any>>, %arg4: memref<1x128x128xbf16, #tpu.memory_space<vmem>>, %arg5: memref<1x1x128xf32, #tpu.memory_space<vmem>>, %arg6: memref<128x128xbf16, #tpu.memory_space<any>>, %arg7: memref<128x128xbf16, #tpu.memory_space<vmem>>, %arg8: memref<128x128xbf16, #tpu.memory_space<vmem>>, %arg9: memref<128x128xbf16, #tpu.memory_space<vmem>>, %arg10: memref<3x!tpu.dma_semaphore, #tpu.memory_space<semaphore_mem>>) attributes {dimension_semantics = [#tpu.dimension_semantics<arbitrary>, #tpu.dimension_semantics<arbitrary>], iteration_bounds = array<i64: 5, 1>, scalar_prefetch = 0 : i64, scratch_operands = 4 : i64, tpu.core_type = #tpu.core_type<tc>, window_params = [{}, {}, {transform_indices = @transform_2, window_bounds = array<i64: 1, 128, 128>}, {transform_indices = @transform_3, window_bounds = array<i64: 1, 1, 128>}, {}]} {
    %c0_i32 = arith.constant 0 : i32
    %0 = arith.cmpi eq, %arg0, %c0_i32 : i32
    %c0_i32_0 = arith.constant 0 : i32
    %1 = arith.cmpi eq, %arg1, %c0_i32_0 : i32
    %2 = arith.andi %0, %1 : i1
    %3 = arith.extui %2 : i1 to i32
    %c0_i32_1 = arith.constant 0 : i32
    %4 = arith.cmpi ne, %3, %c0_i32_1 : i32
    scf.if %4 {
      %c0_i32_9 = arith.constant 0 : i32
      %23 = tpu.memref_slice %arg10[%c0_i32_9] : memref<3x!tpu.dma_semaphore, #tpu.memory_space<semaphore_mem>> -> memref<1x!tpu.dma_semaphore, #tpu.memory_space<semaphore_mem>>
      %24 = tpu.memref_squeeze %23 : memref<1x!tpu.dma_semaphore, #tpu.memory_space<semaphore_mem>> -> memref<!tpu.dma_semaphore, #tpu.memory_space<semaphore_mem>>
      tpu.enqueue_dma source(%arg3 : memref<128x128xbf16, #tpu.memory_space<any>>) target(%arg8 : memref<128x128xbf16, #tpu.memory_space<vmem>>) target_semaphore(%24 : memref<!tpu.dma_semaphore, #tpu.memory_space<semaphore_mem>>)
      %c1_i32_10 = arith.constant 1 : i32
      %25 = tpu.memref_slice %arg10[%c1_i32_10] : memref<3x!tpu.dma_semaphore, #tpu.memory_space<semaphore_mem>> -> memref<1x!tpu.dma_semaphore, #tpu.memory_space<semaphore_mem>>
      %26 = tpu.memref_squeeze %25 : memref<1x!tpu.dma_semaphore, #tpu.memory_space<semaphore_mem>> -> memref<!tpu.dma_semaphore, #tpu.memory_space<semaphore_mem>>
      tpu.enqueue_dma source(%arg2 : memref<128x128xbf16, #tpu.memory_space<any>>) target(%arg7 : memref<128x128xbf16, #tpu.memory_space<vmem>>) target_semaphore(%26 : memref<!tpu.dma_semaphore, #tpu.memory_space<semaphore_mem>>)
      %c1_i32_11 = arith.constant 1 : i32
      %27 = tpu.memref_slice %arg10[%c1_i32_11] : memref<3x!tpu.dma_semaphore, #tpu.memory_space<semaphore_mem>> -> memref<1x!tpu.dma_semaphore, #tpu.memory_space<semaphore_mem>>
      %28 = tpu.memref_squeeze %27 : memref<1x!tpu.dma_semaphore, #tpu.memory_space<semaphore_mem>> -> memref<!tpu.dma_semaphore, #tpu.memory_space<semaphore_mem>>
      tpu.wait_dma2 semaphore(%28 : memref<!tpu.dma_semaphore, #tpu.memory_space<semaphore_mem>>) src(%arg2 : memref<128x128xbf16, #tpu.memory_space<any>>) dst(%arg7 : memref<128x128xbf16, #tpu.memory_space<vmem>>)
      %c0_i32_12 = arith.constant 0 : i32
      %29 = tpu.memref_slice %arg10[%c0_i32_12] : memref<3x!tpu.dma_semaphore, #tpu.memory_space<semaphore_mem>> -> memref<1x!tpu.dma_semaphore, #tpu.memory_space<semaphore_mem>>
      %30 = tpu.memref_squeeze %29 : memref<1x!tpu.dma_semaphore, #tpu.memory_space<semaphore_mem>> -> memref<!tpu.dma_semaphore, #tpu.memory_space<semaphore_mem>>
      tpu.wait_dma2 semaphore(%30 : memref<!tpu.dma_semaphore, #tpu.memory_space<semaphore_mem>>) src(%arg3 : memref<128x128xbf16, #tpu.memory_space<any>>) dst(%arg8 : memref<128x128xbf16, #tpu.memory_space<vmem>>)
    } else {
    }
    %c128_i32 = arith.constant 128 : i32
    %5 = arith.muli %arg1, %c128_i32 : i32
    %6 = tpu.assume_multiple %5, 128 : i32
    %7 = arith.index_cast %6 : i32 to index
    %c0 = arith.constant 0 : index
    %8 = vector.load %arg7[%7, %c0] : memref<128x128xbf16, #tpu.memory_space<vmem>>, vector<128x128xbf16>
    %c4_i32 = arith.constant 4 : i32
    %9 = arith.cmpi slt, %arg0, %c4_i32 : i32
    %c2_i32 = arith.constant 2 : i32
    %10 = arith.remsi %arg0, %c2_i32 : i32
    %c0_i32_2 = arith.constant 0 : i32
    %11 = arith.cmpi eq, %10, %c0_i32_2 : i32
    %12 = arith.extui %11 : i1 to i32
    %c0_i32_3 = arith.constant 0 : i32
    %13 = arith.cmpi ne, %12, %c0_i32_3 : i32
    scf.if %13 {
      %c0_9 = arith.constant 0 : index
      %c0_10 = arith.constant 0 : index
      %23 = vector.load %arg8[%c0_9, %c0_10] : memref<128x128xbf16, #tpu.memory_space<vmem>>, vector<128x128xbf16>
      %cst = arith.constant dense<0.000000e+00> : vector<128x128xf32>
      %24 = tpu.matmul %8, %23, %cst {dimension_numbers = #tpu.dot_dimension_numbers<[1], [0], [0], [1], [0, 0, 1, 1], [], []>} : vector<128x128xbf16>, vector<128x128xbf16>, vector<128x128xf32> -> vector<128x128xf32>
      %25 = arith.truncf %24 : vector<128x128xf32> to vector<128x128xbf16>
      %c0_11 = arith.constant 0 : index
      %c0_12 = arith.constant 0 : index
      %c0_13 = arith.constant 0 : index
      %26 = vector.load %arg4[%c0_11, %c0_12, %c0_13] : memref<1x128x128xbf16, #tpu.memory_space<vmem>>, vector<1x128x128xbf16>
      %27 = vector.shape_cast %26 : vector<1x128x128xbf16> to vector<128x128xbf16>
      %cst_14 = arith.constant dense<0.000000e+00> : vector<128x128xf32>
      %28 = tpu.matmul %25, %27, %cst_14 {dimension_numbers = #tpu.dot_dimension_numbers<[1], [0], [0], [1], [0, 0, 1, 1], [], []>} : vector<128x128xbf16>, vector<128x128xbf16>, vector<128x128xf32> -> vector<128x128xf32>
      %c0_15 = arith.constant 0 : index
      %c0_16 = arith.constant 0 : index
      %c0_17 = arith.constant 0 : index
      %29 = vector.load %arg5[%c0_15, %c0_16, %c0_17] : memref<1x1x128xf32, #tpu.memory_space<vmem>>, vector<1x1x128xf32>
      %30 = vector.shape_cast %29 : vector<1x1x128xf32> to vector<1x128xf32>
      %31 = vector.broadcast %30 : vector<1x128xf32> to vector<128x128xf32>
      %32 = arith.addf %28, %31 : vector<128x128xf32>
      %cst_18 = arith.constant 0.000000e+00 : f32
      %33 = vector.broadcast %cst_18 : f32 to vector<128x128xf32>
      %34 = arith.maximumf %32, %33 : vector<128x128xf32>
      %35 = arith.select %9, %34, %32 : vector<128x128xf32>
      %36 = arith.truncf %35 : vector<128x128xf32> to vector<128x128xbf16>
      %37 = arith.index_cast %6 : i32 to index
      %c0_19 = arith.constant 0 : index
      %38 = vector.load %arg9[%37, %c0_19] : memref<128x128xbf16, #tpu.memory_space<vmem>>, vector<128x128xbf16>
      tpu.vector_store %arg9[%37, %c0_19], %36 {strides = array<i32>} : memref<128x128xbf16, #tpu.memory_space<vmem>>, vector<128x128xbf16>,
    } else {
    }
    %c2_i32_4 = arith.constant 2 : i32
    %14 = arith.remsi %arg0, %c2_i32_4 : i32
    %c1_i32 = arith.constant 1 : i32
    %15 = arith.cmpi eq, %14, %c1_i32 : i32
    %16 = arith.extui %15 : i1 to i32
    %c0_i32_5 = arith.constant 0 : i32
    %17 = arith.cmpi ne, %16, %c0_i32_5 : i32
    scf.if %17 {
      %c0_9 = arith.constant 0 : index
      %c0_10 = arith.constant 0 : index
      %23 = vector.load %arg9[%c0_9, %c0_10] : memref<128x128xbf16, #tpu.memory_space<vmem>>, vector<128x128xbf16>
      %cst = arith.constant dense<0.000000e+00> : vector<128x128xf32>
      %24 = tpu.matmul %8, %23, %cst {dimension_numbers = #tpu.dot_dimension_numbers<[1], [0], [0], [1], [0, 0, 1, 1], [], []>} : vector<128x128xbf16>, vector<128x128xbf16>, vector<128x128xf32> -> vector<128x128xf32>
      %25 = arith.truncf %24 : vector<128x128xf32> to vector<128x128xbf16>
      %c0_11 = arith.constant 0 : index
      %c0_12 = arith.constant 0 : index
      %c0_13 = arith.constant 0 : index
      %26 = vector.load %arg4[%c0_11, %c0_12, %c0_13] : memref<1x128x128xbf16, #tpu.memory_space<vmem>>, vector<1x128x128xbf16>
      %27 = vector.shape_cast %26 : vector<1x128x128xbf16> to vector<128x128xbf16>
      %cst_14 = arith.constant dense<0.000000e+00> : vector<128x128xf32>
      %28 = tpu.matmul %25, %27, %cst_14 {dimension_numbers = #tpu.dot_dimension_numbers<[1], [0], [0], [1], [0, 0, 1, 1], [], []>} : vector<128x128xbf16>, vector<128x128xbf16>, vector<128x128xf32> -> vector<128x128xf32>
      %c0_15 = arith.constant 0 : index
      %c0_16 = arith.constant 0 : index
      %c0_17 = arith.constant 0 : index
      %29 = vector.load %arg5[%c0_15, %c0_16, %c0_17] : memref<1x1x128xf32, #tpu.memory_space<vmem>>, vector<1x1x128xf32>
      %30 = vector.shape_cast %29 : vector<1x1x128xf32> to vector<1x128xf32>
      %31 = vector.broadcast %30 : vector<1x128xf32> to vector<128x128xf32>
      %32 = arith.addf %28, %31 : vector<128x128xf32>
      %cst_18 = arith.constant 0.000000e+00 : f32
      %33 = vector.broadcast %cst_18 : f32 to vector<128x128xf32>
      %34 = arith.maximumf %32, %33 : vector<128x128xf32>
      %35 = arith.select %9, %34, %32 : vector<128x128xf32>
      %36 = arith.truncf %35 : vector<128x128xf32> to vector<128x128xbf16>
      %37 = arith.index_cast %6 : i32 to index
      %c0_19 = arith.constant 0 : index
      %38 = vector.load %arg8[%37, %c0_19] : memref<128x128xbf16, #tpu.memory_space<vmem>>, vector<128x128xbf16>
      tpu.vector_store %arg8[%37, %c0_19], %36 {strides = array<i32>} : memref<128x128xbf16, #tpu.memory_space<vmem>>, vector<128x128xbf16>,
    } else {
    }
    %c4_i32_6 = arith.constant 4 : i32
    %18 = arith.cmpi eq, %arg0, %c4_i32_6 : i32
    %c0_i32_7 = arith.constant 0 : i32
    %19 = arith.cmpi eq, %arg1, %c0_i32_7 : i32
    %20 = arith.andi %18, %19 : i1
    %21 = arith.extui %20 : i1 to i32
    %c0_i32_8 = arith.constant 0 : i32
    %22 = arith.cmpi ne, %21, %c0_i32_8 : i32
    scf.if %22 {
      %c2_i32_9 = arith.constant 2 : i32
      %23 = tpu.memref_slice %arg10[%c2_i32_9] : memref<3x!tpu.dma_semaphore, #tpu.memory_space<semaphore_mem>> -> memref<1x!tpu.dma_semaphore, #tpu.memory_space<semaphore_mem>>
      %24 = tpu.memref_squeeze %23 : memref<1x!tpu.dma_semaphore, #tpu.memory_space<semaphore_mem>> -> memref<!tpu.dma_semaphore, #tpu.memory_space<semaphore_mem>>
      tpu.enqueue_dma source(%arg9 : memref<128x128xbf16, #tpu.memory_space<vmem>>) target(%arg6 : memref<128x128xbf16, #tpu.memory_space<any>>) target_semaphore(%24 : memref<!tpu.dma_semaphore, #tpu.memory_space<semaphore_mem>>)
      %c2_i32_10 = arith.constant 2 : i32
      %25 = tpu.memref_slice %arg10[%c2_i32_10] : memref<3x!tpu.dma_semaphore, #tpu.memory_space<semaphore_mem>> -> memref<1x!tpu.dma_semaphore, #tpu.memory_space<semaphore_mem>>
      %26 = tpu.memref_squeeze %25 : memref<1x!tpu.dma_semaphore, #tpu.memory_space<semaphore_mem>> -> memref<!tpu.dma_semaphore, #tpu.memory_space<semaphore_mem>>
      tpu.wait_dma2 semaphore(%26 : memref<!tpu.dma_semaphore, #tpu.memory_space<semaphore_mem>>) src(%arg9 : memref<128x128xbf16, #tpu.memory_space<vmem>>) dst(%arg6 : memref<128x128xbf16, #tpu.memory_space<any>>)
    } else {
    }
    return
  }
  func.func @transform_2(%arg0: i32, %arg1: i32) -> (i32, i32, i32) {
    %c0_i32 = arith.constant 0 : i32
    %c0_i32_0 = arith.constant 0 : i32
    %c0_i32_1 = arith.constant 0 : i32
    return %arg0, %c0_i32, %c0_i32_0 : i32, i32, i32
  }
  func.func @transform_3(%arg0: i32, %arg1: i32) -> (i32, i32, i32) {
    %c0_i32 = arith.constant 0 : i32
    %c0_i32_0 = arith.constant 0 : i32
    %c0_i32_1 = arith.constant 0 : i32
    return %arg0, %c0_i32, %c0_i32_0 : i32, i32, i32
  }
}

</mosaic_0001>

<bundles_post_ra>
// kernel: tpu_custom_call.1
= control target key start
LH: loop header
LB: loop body
LE: loop exit
PB: predicated region body
PF: predicated region fallthrough
CT: control target
= control target key end

     0   :  { %9 = vsyncpa [#allocation7], 0  ;;  %s1840_s0 = inlined_call_operand.hbm [shape: bf16[128,128], index: 0, kind: input, shape index: {}]   ;;  %s1841_s1 = inlined_call_operand.hbm [shape: bf16[128,128], index: 1, kind: input, shape index: {}]   ;;  %s1842_s2 = inlined_call_operand.hbm [shape: bf16[5,128,128], index: 2, kind: input, shape index: {}]   ;;  %s1843_s3 = inlined_call_operand.vmem [shape: f32[5,1,128], index: 3, kind: input, shape index: {}]   ;;  %s1844_s4 = inlined_call_operand.hbm [shape: bf16[128,128], index: 4, kind: output, shape index: {}]  }
   0x1   :  { %11 = vsyncpa [#allocation7 + $0x1], 0  ;;  %s1474_s15 = smov 0   ;;  %s1476_s16 = smov 0  }
   0x2   :  { %s1478_s17 = smov 0   ;;  %s1480_s18 = smov 0  }
   0x3   :  { %s1482_s19 = smov 0   ;;  %s1484_s20 = smov 0  }
   0x4 LB: > { %s958_s21 = sadd.s32 4294967295, %s1441_s20   ;;  %s26_s22 = sadd.s32 1, %s1437_s19  ;;  %s1441_s20 = sphi %s1484_s20, %s17_s20   ;;  %s1437_s19 = sphi %s1482_s19, %s1856_s19   ;;  %s1433_s18 = sphi %s1480_s18, %s1855_s18   ;;  %s1429_s17 = sphi %s1478_s17, %s1854_s17   ;;  %s1425_s16 = sphi %s1476_s16, %s1853_s16   ;;  %s1421_s15 = sphi %s1474_s15, %s1852_s15  }
   0x5   : > { %p28_p0 = scmp.ge.s32.totalorder %s26_s22, 5  ;;  %s33_s23 = sadd.s32 1, %s1429_s17 }
   0x6   : > { %p39_p1 = scmp.ne.s32.totalorder %s1429_s17, %s1425_s16  ;;  %p40_p2 = scmp.eq.s32.totalorder %s1441_s20, 0 }
   0x7   : > { %s1858_s22 = smov (%p28_p0, %s26_s22), 0  ;;  %p46_p4 = scmp.ne.s32.totalorder %s1425_s16, %s1421_s15 }
   0x8   : > { %p1510_p3 = por %p40_p2, %p39_p1  ;;  %s30_s25 = ssub.s32 %s1437_s19, %s1858_s22 }
   0x9   : > { %p47_p5 = scmp.eq.s32.totalorder %s958_s21, 0  ;;  %p31_p6 = scmp.eq.s32.totalorder %s30_s25, 0 }
   0xa   : > { %p1201_p8 = scmp.lt.s32.totalorder %s1441_s20, 5  ;;  %s80_s28 = sand.u32 1, %s1429_s17  }
   0xb   : > { %p1517_p7 = por %p47_p5, %p46_p4  ;;  %s994_s29 = sshll.u32 %s1437_s19, 10 }
   0xc   : > { %s1523_s27 = scalar_select %p31_p6, %s1429_s17, %s33_s23  }
   0xd   : > { %s962_s30 = sshll.u32 %s80_s28, 6  ;;  %s1530_s7 = scalar_lea.hbm %s1842_s2, %s994_s29 }
   0xe   : > { %s84_s8 = scalar_lea.vmem [#allocation6], %s962_s30  ;;  %p1534_p9 = pnand %p1201_p8, %p1510_p3 }
   0xf   : > { %s91_s9 = sshll.u32 %s84_s8, 4  ;;  %s1540_s11 = scalar_lea.sflag [#allocation7], %s80_s28  ;;  %s1538_s9 = int_to_ptr.vmem [resolvable:$true] %s91_s9 }
  0x10   : > { %s1271_s12 = scalar_lea.hbm %s1530_s7, 1024  ;;  %p1273_p11 = pneg %p1534_p9 }
  0x11   : > { %p1272_p10 = scmp.ne.s32.totalorder %s1530_s7, %s1271_s12  ;;  %s1276_s15 = scalar_lea.hbm %s1842_s2, 5120 }
  0x12   : > { %p1277_p0 = scmp.lt.u32.totalorder %s1530_s7, %s1842_s2  ;;  %p1278_p1 = scmp.lt.u32.totalorder %s1276_s15, %s1271_s12 }
  0x13   : > { %p1274_p12 = pnand %p1273_p11, %p1272_p10  ;;  %p1280_p3 = scmp.lt.u32.totalorder %s1271_s12, %s1530_s7 }
  0x14   : > { %p1279_p2 = por %p1278_p1, %p1277_p0 }
  0x15   : > { %p1275_p13 = pneg %p1274_p12 }
  0x16   : > { %p1281_p4 = por %p1280_p3, %p1279_p2 }
  0x18   : > { %p1282_p5 = pnand %p1281_p4, %p1275_p13 }
  0x1a   : > { %1285 = shalt.err (!%p1282_p5)
}
  0x1b   : > { %s1286_s24 = scalar_lea.vmem %s1538_s9, 1024  ;;  %s1443_s25 = smov [#allocation6]  }
  0x1c   : > { %p1287_p6 = scmp.ne.s32.totalorder %s1538_s9, %s1286_s24  ;;  %s1291_s28 = sshll.u32 %s1443_s25, 4  ;;  %s1292_s28 = int_to_ptr.vmem [resolvable:$false] %s1291_s28 }
  0x1d   : > { %s1293_s29 = scalar_lea.vmem %s1292_s28, 2048  ;;  %p1294_p12 = scmp.lt.s32.totalorder %s1538_s9, %s1292_s28 }
  0x1e   : > { %p1289_p8 = pnand %p1287_p6, %p1273_p11  ;;  %p1295_p0 = scmp.lt.s32.totalorder %s1293_s29, %s1286_s24 }
  0x20   : > { %p1290_p10 = pneg %p1289_p8  ;;  %p1296_p1 = por %p1295_p0, %p1294_p12 }
  0x22   : > { %p1297_p2 = pnand %p1296_p1, %p1290_p10 }
  0x24   : > { %1300 = shalt.err (!%p1297_p2)
}
  0x25   : > { %s1444_s30 = smov 64   ;;  %s1445_s5 = smov 4  }
  0x26   : > { %1200 = dma.hbm_to_vmem [thread:$0]  (!%p1534_p9), %s1530_s7, 1024, %s1538_s9, %s1540_s11, %s1444_s30, %s1444_s30, %s1445_s5  }
  0x27   : > { %p966_p11 = scmp.lt.s32.totalorder %s1441_s20, 1 }
  0x28   : > { %s109_s6 = sand.u32 (!%p966_p11), 1, %s1425_s16  }
  0x29   : > { %107 = sbr.rel (%p966_p11) target bundleno = 1126 (0x466), region = 28  ;;  %s967_s8 = sshll.u32 (!%p966_p11), %s109_s6, 6 }
  0x2a   : > { %s110_s12 = scalar_lea.sflag (!%p966_p11), [#allocation7], %s109_s6  ;;  %s1570_s13 = scalar_lea.vmem (!%p966_p11), [#allocation6], %s967_s8 }
  0x30   : > { %1404 = dma.done.wait (%p1517_p7), %s110_s12, 1024  }
  0x31   : > { %1406 = vsyncadd (%p1517_p7), %s110_s12, 4294966272  ;;  %p130_p9 = scmp.lt.s32.totalorder %s1433_s18, 4  ;;  %p134_p13 = scmp.eq.s32.totalorder %s1433_s18, 0 }
  0x32   : > { %s1446_s9 = smov [#allocation3]   ;;  %s1447_s11 = smov [#allocation2]  }
  0x33   : > { %s131_s7 = scalar_select %p130_p9, %s1433_s18, 4 }
  0x34   : > { %s147_s10 = sshll.u32 %s1446_s9, 4  ;;  %s159_s14 = sshll.u32 %s1447_s11, 4  ;;  %s148_s10 = int_to_ptr.vmem [resolvable:$true] %s147_s10  ;;  %s160_s14 = int_to_ptr.vmem [resolvable:$true] %s159_s14 }
  0x35   : > { %s1584_s23 = scalar_lea.vmem %s1843_s3, %s131_s7  ;;  %s1301_s25 = scalar_lea.hbm %s1841_s1, 1024 }
  0x36   : > { %p1302_p7 = scmp.ne.s32.totalorder %s1841_s1, %s1301_s25  ;;  %p1307_p5 = scmp.lt.u32.totalorder %s1301_s25, %s1841_s1 }
  0x38   : > { %p1303_p3 = pnand %p1302_p7, %p134_p13 }
  0x3a   : > { %p1304_p4 = pneg %p1303_p3 }
  0x3c   : > { %p1309_p6 = pnand %p1307_p5, %p1304_p4 }
  0x3e   : > { %1312 = shalt.err (!%p1309_p6)  }
  0x3f   : > { %s1313_s6 = scalar_lea.vmem %s148_s10, 1024  ;;  %p1320_p0 = scmp.lt.s32.totalorder %s148_s10, %s148_s10 }
  0x40   : > { %p1314_p8 = scmp.ne.s32.totalorder %s148_s10, %s1313_s6  ;;  %p1321_p1 = scmp.lt.s32.totalorder %s1313_s6, %s1313_s6 }
  0x42   : > { %p1315_p10 = pnand %p1314_p8, %p134_p13  ;;  %p1322_p2 = por %p1321_p1, %p1320_p0 }
  0x44   : > { %p1316_p12 = pneg %p1315_p10 }
  0x46   : > { %p1323_p11 = pnand %p1322_p2, %p1316_p12 }
  0x48   : > { %1326 = shalt.err (!%p1323_p11)  }
  0x49   : > { %1191 = dma.hbm_to_vmem [thread:$0]  (%p134_p13), %s1841_s1, 1024, %s148_s10, [#allocation5] }
  0x4a   : > { %s1327_s11 = scalar_lea.hbm %s1840_s0, 1024 }
  0x4b   : > { %p1328_p7 = scmp.ne.s32.totalorder %s1840_s0, %s1327_s11  ;;  %p1333_p5 = scmp.lt.u32.totalorder %s1327_s11, %s1840_s0 }
  0x4d   : > { %p1329_p3 = pnand %p1328_p7, %p134_p13 }
  0x4f   : > { %p1330_p4 = pneg %p1329_p3 }
  0x51   : > { %p1335_p6 = pnand %p1333_p5, %p1330_p4 }
  0x53   : > { %1338 = shalt.err (!%p1335_p6)  }
  0x54   : > { %s1339_s25 = scalar_lea.vmem %s160_s14, 1024  ;;  %p1346_p0 = scmp.lt.s32.totalorder %s160_s14, %s160_s14 }
  0x55   : > { %p1340_p8 = scmp.ne.s32.totalorder %s160_s14, %s1339_s25  ;;  %p1347_p1 = scmp.lt.s32.totalorder %s1339_s25, %s1339_s25 }
  0x57   : > { %p1341_p10 = pnand %p1340_p8, %p134_p13  ;;  %p1348_p2 = por %p1347_p1, %p1346_p0 }
  0x59   : > { %p1342_p12 = pneg %p1341_p10 }
  0x5b   : > { %p1349_p11 = pnand %p1348_p2, %p1342_p12 }
  0x5d   : > { %1352 = shalt.err (!%p1349_p11)  }
  0x5e   : > { %1192 = dma.hbm_to_vmem [thread:$0]  (%p134_p13), %s1840_s0, 1024, %s160_s14, [#allocation5 + $0x1] }
  0x5f   : > { %1408 = dma.done.wait (%p134_p13), [#allocation5 + $0x1], 1024 }
  0x60   : > { %1410 = vsyncadd (%p134_p13), [#allocation5 + $0x1], 4294966272 }
  0x61   : > { %1412 = dma.done.wait (%p134_p13), [#allocation5], 1024 }
  0x62   : > { %1414 = vsyncadd (%p134_p13), [#allocation5], 4294966272  ;;  %p183_p7 = scmp.lt.s32.totalorder %s1433_s18, 0  ;;  %s184_s29 = ssub.s32 0, %s1433_s18  ;;  %v1635_v0 = vld [vmem:[#allocation2] sm:$0xff]  ;;  %v1637_v1 = vld [vmem:[#allocation2 + $0x8] sm:$0xff] }
  0x63   : > { %s969_s30 = smin.u32 %s1433_s18, %s184_s29  ;;  %v1639_v2 = vld [vmem:[#allocation2 + $0x10] sm:$0xff]  ;;  %v1641_v3 = vld [vmem:[#allocation2 + $0x18] sm:$0xff]  ;;  %v1643_v4 = vld [vmem:[#allocation2 + $0x20] sm:$0xff] }
  0x64   : > { %s186_s5 = sand.u32 1, %s969_s30   ;;  %v1645_v5 = vld [vmem:[#allocation2 + $0x28] sm:$0xff]  ;;  %v1647_v6 = vld [vmem:[#allocation2 + $0x30] sm:$0xff]  ;;  %v1649_v7 = vld [vmem:[#allocation2 + $0x38] sm:$0xff] }
  0x65   : > { %s187_s6 = ssub.s32 0, %s186_s5 }
  0x66   : > { %s1860_s6 = smov (!%p183_p7, %s187_s6), %s186_s5 }
  0x67   : > { %p970_p13 = scmp.ne.s32.totalorder %s1860_s6, 0 }
  0x68   : > { %v193_v8 = vld [vmem:[#allocation3] sm:$0xff] (!%p970_p13)  ;;  %v194_v9 = vld [vmem:[#allocation3 + $0x8] sm:$0xff] (!%p970_p13)  ;;  %1077 = vmatprep.mubr.bf16.mxu0 (!%p970_p13), %v1635_v0  ;;  %v195_v10 = vld [vmem:[#allocation3 + $0x10] sm:$0xff] (!%p970_p13) }
  0x69   : > { %192 = sbr.rel (%p970_p13) target bundleno = 602 (0x25a), region = 48  ;;  %1061 = vmatprep.subr.bf16.mxu0 (!%p970_p13), %v193_v8  ;;  %v1255_v11 = vld [vmem:[%s1570_s13] sm:$0xff] (!%p970_p13)   ;;  %v1256_v12 = vld [vmem:[%s1570_s13 + $0x8] sm:$0xff] (!%p970_p13)   ;;  %v1257_v13 = vld [vmem:[%s1570_s13 + $0x10] sm:$0xff] (!%p970_p13)  }
  0x6a   : > { %1062 = vmatpush3.bf16.msra.mxu0 (!%p970_p13), %v193_v8  ;;  %1093 = vmatprep.subr.bf16.mxu1 (!%p970_p13), %v1255_v11  ;;  %v196_v14 = vld [vmem:[#allocation3 + $0x18] sm:$0xff] (!%p970_p13)  ;;  %v197_v16 = vld [vmem:[#allocation3 + $0x20] sm:$0xff] (!%p970_p13)  ;;  %v198_v18 = vld [vmem:[#allocation3 + $0x28] sm:$0xff] (!%p970_p13) }
  0x6b   : > { %1063 = vmatprep.subr.bf16.mxu0 (!%p970_p13), %v194_v9  ;;  %1094 = vmatpush3.bf16.msra.mxu1 (!%p970_p13), %v1255_v11  ;;  %v1258_v15 = vld [vmem:[%s1570_s13 + $0x18] sm:$0xff] (!%p970_p13)   ;;  %v1259_v17 = vld [vmem:[%s1570_s13 + $0x20] sm:$0xff] (!%p970_p13)   ;;  %v1260_v19 = vld [vmem:[%s1570_s13 + $0x28] sm:$0xff] (!%p970_p13)  }
  0x6c   : > { %1095 = vmatprep.subr.bf16.mxu1 (!%p970_p13), %v1256_v12  ;;  %v199_v20 = vld [vmem:[#allocation3 + $0x30] sm:$0xff] (!%p970_p13)  ;;  %v200_v22 = vld [vmem:[#allocation3 + $0x38] sm:$0xff] (!%p970_p13)  ;;  %v1671_v48 = vld [vmem:[%s1584_s23] ss:$0 sm:$0xff] (!%p970_p13) }
  0x6d   : > { %v1261_v21 = vld [vmem:[%s1570_s13 + $0x30] sm:$0xff] (!%p970_p13)   ;;  %v1262_v23 = vld [vmem:[%s1570_s13 + $0x38] sm:$0xff] (!%p970_p13)  }
  0x6e   : > { %1064 = vmatpush3.bf16.msra.mxu0 (!%p970_p13), %v194_v9 }
  0x6f   : > { %1065 = vmatprep.subr.bf16.mxu0 (!%p970_p13), %v195_v10  ;;  %1096 = vmatpush3.bf16.msra.mxu1 (!%p970_p13), %v1256_v12 }
  0x70   : > { %1097 = vmatprep.subr.bf16.mxu1 %v1257_v13  ;;  %s490_s14 = scalar_select %p130_p9, 1, 0 }
  0x72   : > { %1066 = vmatpush3.bf16.msra.mxu0 %v195_v10  ;;  %v491_v51 = vstv %s490_s14 }
  0x73   : > { %1067 = vmatprep.subr.bf16.mxu0 %v196_v14  ;;  %1098 = vmatpush3.bf16.msra.mxu1 %v1257_v13  ;;  %vm1676_vm0 = vcmp.eq.s32.totalorder %v491_v51, 1 }
  0x74   : > { %1099 = vmatprep.subr.bf16.mxu1 %v1258_v15 }
  0x76   : > { %1068 = vmatpush3.bf16.msra.mxu0 %v196_v14 }
  0x77   : > { %1069 = vmatprep.subr.bf16.mxu0 %v197_v16  ;;  %1100 = vmatpush3.bf16.msra.mxu1 %v1258_v15 }
  0x78   : > { %1101 = vmatprep.subr.bf16.mxu1 %v1259_v17 }
  0x7a   : > { %1070 = vmatpush3.bf16.msra.mxu0 %v197_v16 }
  0x7b   : > { %1071 = vmatprep.subr.bf16.mxu0 %v198_v18  ;;  %1102 = vmatpush3.bf16.msra.mxu1 %v1259_v17 }
  0x7c   : > { %1103 = vmatprep.subr.bf16.mxu1 %v1260_v19 }
  0x7e   : > { %1072 = vmatpush3.bf16.msra.mxu0 %v198_v18 }
  0x7f   : > { %1073 = vmatprep.subr.bf16.mxu0 %v199_v20  ;;  %1104 = vmatpush3.bf16.msra.mxu1 %v1260_v19 }
  0x80   : > { %1105 = vmatprep.subr.bf16.mxu1 %v1261_v21 }
  0x82   : > { %1074 = vmatpush3.bf16.msra.mxu0 %v199_v20 }
  0x83   : > { %1075 = vmatprep.subr.bf16.mxu0 %v200_v22  ;;  %1106 = vmatpush3.bf16.msra.mxu1 %v1261_v21 }
  0x84   : > { %1107 = vmatprep.subr.bf16.mxu1 %v1262_v23 }
  0x86   : > { %1076 = vmatpush3.bf16.msra.mxu0 %v200_v22 }
  0x87   : > { %1108 = vmatpush3.bf16.msra.mxu1 %v1262_v23 }
  0x89   : > { %1078 = vmatmul.mubr.bf16.vlgmr.msra.gmra.mrb[0].mxu0 %v1637_v1 }
  0x8a   : > { %1081 = vmatprep.mubr.bf16.mxu0 %v1639_v2 }
  0x91   : > { %1082 = vmatmul.mubr.bf16.gmra.mrb[4].mxu0 %v1641_v3 }
  0x92   : > { %1085 = vmatprep.mubr.bf16.mxu0 %v1643_v4 }
  0x99   : > { %1086 = vmatmul.mubr.bf16.gmra.mrb[8].mxu0 %v1645_v5 }
  0x9a   : > { %1089 = vmatprep.mubr.bf16.mxu0 %v1647_v6 }
  0xa1   : > { %1090 = vmatmul.mubr.bf16.gmra.mrb[12].mxu0 %v1649_v7 }
 0x15c   : > { %v1079_v24 = vpop.f32.mrb[0].mxu0 }
 0x15d   : > { %v235_v25 = vpop.f32.mrb[1].mxu0 }
 0x15e   : > { %v1080_v26 = vpop.f32.mrb[2].mxu0 }
 0x15f   : > { %v299_v27 = vpack.c.bf16 %v1080_v26, %v1079_v24  ;;  %v238_v28 = vpop.f32.mrb[3].mxu0 }
 0x160   : > { %v298_v29 = vpack.c.bf16 %v238_v28, %v235_v25 }
 0x162   : > { %1109 = vmatprep.mubr.bf16.mxu1 %v298_v29 }
 0x163   : > { %1110 = vmatmul.mubr.bf16.vlgmr.msra.gmra.mrb[0].mxu1 %v299_v27 }
 0x164   : > { %v1083_v30 = vpop.f32.mrb[4].mxu0 }
 0x165   : > { %v251_v31 = vpop.f32.mrb[5].mxu0 }
 0x166   : > { %v1084_v32 = vpop.f32.mrb[6].mxu0 }
 0x167   : > { %v301_v33 = vpack.c.bf16 %v1084_v32, %v1083_v30  ;;  %v254_v34 = vpop.f32.mrb[7].mxu0 }
 0x168   : > { %v300_v35 = vpack.c.bf16 %v254_v34, %v251_v31 }
 0x16a   : > { %1113 = vmatprep.mubr.bf16.mxu1 %v300_v35 }
 0x16b   : > { %1114 = vmatmul.mubr.bf16.gmra.mrb[4].mxu1 %v301_v33 }
 0x16c   : > { %v1087_v36 = vpop.f32.mrb[8].mxu0 }
 0x16d   : > { %v267_v37 = vpop.f32.mrb[9].mxu0 }
 0x16e   : > { %v1088_v38 = vpop.f32.mrb[10].mxu0 }
 0x16f   : > { %v303_v39 = vpack.c.bf16 %v1088_v38, %v1087_v36  ;;  %v270_v40 = vpop.f32.mrb[11].mxu0 }
 0x170   : > { %v302_v41 = vpack.c.bf16 %v270_v40, %v267_v37 }
 0x172   : > { %1117 = vmatprep.mubr.bf16.mxu1 %v302_v41 }
 0x173   : > { %1118 = vmatmul.mubr.bf16.gmra.mrb[8].mxu1 %v303_v39 }
 0x174   : > { %v1091_v42 = vpop.f32.mrb[12].mxu0 }
 0x175   : > { %v283_v43 = vpop.f32.mrb[13].mxu0 }
 0x176   : > { %v1092_v44 = vpop.f32.mrb[14].mxu0 }
 0x177   : > { %v305_v45 = vpack.c.bf16 %v1092_v44, %v1091_v42  ;;  %v286_v46 = vpop.f32.mrb[15].mxu0 }
 0x178   : > { %v304_v47 = vpack.c.bf16 %v286_v46, %v283_v43 }
 0x17a   : > { %1121 = vmatprep.mubr.bf16.mxu1 %v304_v47 }
 0x17b   : > { %1122 = vmatmul.mubr.bf16.gmra.mrb[12].mxu1 %v305_v45 }
 0x236   : > { %v1111_v49 = vpop.f32.mrb[0].mxu1 }
 0x237   : > { %v420_v50 = vadd.f32 %v1111_v49, %v1671_v48  ;;  %v411_v52 = vpop.f32.mrb[1].mxu1 }
 0x238   : > { %v412_v53 = vadd.f32 %v1671_v48, %v411_v52  ;;  %v1112_v54 = vpop.f32.mrb[2].mxu1 }
 0x239   : > { %v476_v55 = vmax.f32 %v420_v50, 0.0  ;;  %v423_v56 = vadd.f32 %v1112_v54, %v1671_v48  ;;  %v414_v57 = vpop.f32.mrb[3].mxu1 }
 0x23a   : > { %v474_v59 = vmax.f32 %v412_v53, 0.0  ;;  %v415_v60 = vadd.f32 %v1671_v48, %v414_v57 }
 0x23b   : > { %v477_v61 = vmax.f32 %v423_v56, 0.0  ;;  %v495_v63 = vsel %vm1676_vm0, %v476_v55, %v420_v50 }
 0x23c   : > { %v475_v62 = vmax.f32 %v415_v60, 0.0  ;;  %v493_v9 = vsel %vm1676_vm0, %v474_v59, %v412_v53 }
 0x23d   : > { %v496_v8 = vsel %vm1676_vm0, %v477_v61, %v423_v56 }
 0x23e   : > { %v510_v10 = vpack.c.bf16 %v496_v8, %v495_v63  ;;  %v494_v11 = vsel %vm1676_vm0, %v475_v62, %v415_v60  ;;  %v1115_v12 = vpop.f32.mrb[4].mxu1 }
 0x23f   : > { %v509_v13 = vpack.c.bf16 %v494_v11, %v493_v9  ;;  %v436_v14 = vadd.f32 %v1115_v12, %v1671_v48  ;;  %v427_v15 = vpop.f32.mrb[5].mxu1 }
 0x240   : > { %520 = vst [vmem:[#allocation4 + $0x8] sm:$0xff] %v510_v10  ;;  %v428_v16 = vadd.f32 %v1671_v48, %v427_v15  ;;  %v1116_v17 = vpop.f32.mrb[6].mxu1 }
 0x241   : > { %519 = vst [vmem:[#allocation4] sm:$0xff] %v509_v13  ;;  %v480_v18 = vmax.f32 %v436_v14, 0.0  ;;  %v439_v19 = vadd.f32 %v1116_v17, %v1671_v48  ;;  %v430_v20 = vpop.f32.mrb[7].mxu1 }
 0x242   : > { %v478_v21 = vmax.f32 %v428_v16, 0.0  ;;  %v431_v22 = vadd.f32 %v1671_v48, %v430_v20 }
 0x243   : > { %v481_v23 = vmax.f32 %v439_v19, 0.0  ;;  %v499_v25 = vsel %vm1676_vm0, %v480_v18, %v436_v14 }
 0x244   : > { %v479_v24 = vmax.f32 %v431_v22, 0.0  ;;  %v497_v27 = vsel %vm1676_vm0, %v478_v21, %v428_v16 }
 0x245   : > { %v500_v26 = vsel %vm1676_vm0, %v481_v23, %v439_v19 }
 0x246   : > { %v512_v28 = vpack.c.bf16 %v500_v26, %v499_v25  ;;  %v498_v29 = vsel %vm1676_vm0, %v479_v24, %v431_v22  ;;  %v1119_v30 = vpop.f32.mrb[8].mxu1 }
 0x247   : > { %v511_v31 = vpack.c.bf16 %v498_v29, %v497_v27  ;;  %v452_v32 = vadd.f32 %v1119_v30, %v1671_v48  ;;  %v443_v33 = vpop.f32.mrb[9].mxu1 }
 0x248   : > { %522 = vst [vmem:[#allocation4 + $0x18] sm:$0xff] %v512_v28  ;;  %v444_v34 = vadd.f32 %v1671_v48, %v443_v33  ;;  %v1120_v35 = vpop.f32.mrb[10].mxu1 }
 0x249   : > { %521 = vst [vmem:[#allocation4 + $0x10] sm:$0xff] %v511_v31  ;;  %v484_v36 = vmax.f32 %v452_v32, 0.0  ;;  %v455_v37 = vadd.f32 %v1120_v35, %v1671_v48  ;;  %v446_v38 = vpop.f32.mrb[11].mxu1 }
 0x24a   : > { %v482_v39 = vmax.f32 %v444_v34, 0.0  ;;  %v447_v40 = vadd.f32 %v1671_v48, %v446_v38 }
 0x24b   : > { %v485_v41 = vmax.f32 %v455_v37, 0.0  ;;  %v503_v43 = vsel %vm1676_vm0, %v484_v36, %v452_v32 }
 0x24c   : > { %v483_v42 = vmax.f32 %v447_v40, 0.0  ;;  %v501_v45 = vsel %vm1676_vm0, %v482_v39, %v444_v34 }
 0x24d   : > { %v504_v44 = vsel %vm1676_vm0, %v485_v41, %v455_v37 }
 0x24e   : > { %v514_v46 = vpack.c.bf16 %v504_v44, %v503_v43  ;;  %v502_v47 = vsel %vm1676_vm0, %v483_v42, %v447_v40  ;;  %v1123_v49 = vpop.f32.mrb[12].mxu1 }
 0x24f   : > { %v513_v50 = vpack.c.bf16 %v502_v47, %v501_v45  ;;  %v468_v51 = vadd.f32 %v1123_v49, %v1671_v48  ;;  %v459_v52 = vpop.f32.mrb[13].mxu1 }
 0x250   : > { %524 = vst [vmem:[#allocation4 + $0x28] sm:$0xff] %v514_v46  ;;  %v460_v53 = vadd.f32 %v1671_v48, %v459_v52  ;;  %v1124_v54 = vpop.f32.mrb[14].mxu1 }
 0x251   : > { %523 = vst [vmem:[#allocation4 + $0x20] sm:$0xff] %v513_v50  ;;  %v488_v55 = vmax.f32 %v468_v51, 0.0  ;;  %v471_v56 = vadd.f32 %v1124_v54, %v1671_v48  ;;  %v462_v57 = vpop.f32.mrb[15].mxu1 }
 0x252   : > { %v486_v59 = vmax.f32 %v460_v53, 0.0  ;;  %v463_v60 = vadd.f32 %v1671_v48, %v462_v57 }
 0x253   : > { %v489_v61 = vmax.f32 %v471_v56, 0.0  ;;  %v507_v63 = vsel %vm1676_vm0, %v488_v55, %v468_v51 }
 0x254   : > { %v487_v62 = vmax.f32 %v463_v60, 0.0  ;;  %v505_v9 = vsel %vm1676_vm0, %v486_v59, %v460_v53 }
 0x255   : > { %v508_v8 = vsel %vm1676_vm0, %v489_v61, %v471_v56 }
 0x256   : > { %v516_v10 = vpack.c.bf16 %v508_v8, %v507_v63  ;;  %v506_v11 = vsel %vm1676_vm0, %v487_v62, %v463_v60 }
 0x257   : > { %v515_v12 = vpack.c.bf16 %v506_v11, %v505_v9 }
 0x258   : > { %526 = vst [vmem:[#allocation4 + $0x38] sm:$0xff] %v516_v10 }
 0x259   : > { %525 = vst [vmem:[#allocation4 + $0x30] sm:$0xff] %v515_v12 }
 0x25a PF: > { %p980_p3 = scmp.ne.s32.totalorder %s1860_s6, 1 }
 0x25b   : > { %v531_v48 = vld [vmem:[#allocation4] sm:$0xff] (!%p980_p3)  ;;  %v532_v13 = vld [vmem:[#allocation4 + $0x8] sm:$0xff] (!%p980_p3)  ;;  %1141 = vmatprep.mubr.bf16.mxu0 (!%p980_p3), %v1635_v0  ;;  %v533_v14 = vld [vmem:[#allocation4 + $0x10] sm:$0xff] (!%p980_p3) }
 0x25c   : > { %530 = sbr.rel (%p980_p3) target bundleno = 1101 (0x44d), region = 52  ;;  %1125 = vmatprep.subr.bf16.mxu0 (!%p980_p3), %v531_v48  ;;  %v1263_v58 = vld [vmem:[%s1570_s13] sm:$0xff] (!%p980_p3)   ;;  %v1264_v15 = vld [vmem:[%s1570_s13 + $0x8] sm:$0xff] (!%p980_p3)   ;;  %v1265_v16 = vld [vmem:[%s1570_s13 + $0x10] sm:$0xff] (!%p980_p3)  }
 0x25d   : > { %1126 = vmatpush3.bf16.msra.mxu0 (!%p980_p3), %v531_v48  ;;  %1157 = vmatprep.subr.bf16.mxu1 (!%p980_p3), %v1263_v58  ;;  %v534_v17 = vld [vmem:[#allocation4 + $0x18] sm:$0xff] (!%p980_p3)  ;;  %v535_v18 = vld [vmem:[#allocation4 + $0x20] sm:$0xff] (!%p980_p3)  ;;  %v536_v20 = vld [vmem:[#allocation4 + $0x28] sm:$0xff] (!%p980_p3) }
 0x25e   : > { %1127 = vmatprep.subr.bf16.mxu0 (!%p980_p3), %v532_v13  ;;  %1158 = vmatpush3.bf16.msra.mxu1 (!%p980_p3), %v1263_v58  ;;  %v1266_v0 = vld [vmem:[%s1570_s13 + $0x18] sm:$0xff] (!%p980_p3)   ;;  %v1267_v19 = vld [vmem:[%s1570_s13 + $0x20] sm:$0xff] (!%p980_p3)   ;;  %v1268_v21 = vld [vmem:[%s1570_s13 + $0x28] sm:$0xff] (!%p980_p3)  }
 0x25f   : > { %1159 = vmatprep.subr.bf16.mxu1 (!%p980_p3), %v1264_v15  ;;  %v1269_v23 = vld [vmem:[%s1570_s13 + $0x30] sm:$0xff] (!%p980_p3)   ;;  %v538_v24 = vld [vmem:[#allocation4 + $0x38] sm:$0xff] (!%p980_p3)  ;;  %v1745_v43 = vld [vmem:[%s1584_s23] ss:$0 sm:$0xff] (!%p980_p3) }
 0x260   : > { %v537_v22 = vld [vmem:[#allocation4 + $0x30] sm:$0xff] (!%p980_p3)  ;;  %v1270_v25 = vld [vmem:[%s1570_s13 + $0x38] sm:$0xff] (!%p980_p3)  }
 0x261   : > { %1128 = vmatpush3.bf16.msra.mxu0 (!%p980_p3), %v532_v13 }
 0x262   : > { %1129 = vmatprep.subr.bf16.mxu0 (!%p980_p3), %v533_v14  ;;  %1160 = vmatpush3.bf16.msra.mxu1 (!%p980_p3), %v1264_v15 }
 0x263   : > { %1161 = vmatprep.subr.bf16.mxu1 %v1265_v16  ;;  %s828_s13 = scalar_select %p130_p9, 1, 0 }
 0x265   : > { %1130 = vmatpush3.bf16.msra.mxu0 %v533_v14  ;;  %v829_v46 = vstv %s828_s13 }
 0x266   : > { %1131 = vmatprep.subr.bf16.mxu0 %v534_v17  ;;  %1162 = vmatpush3.bf16.msra.mxu1 %v1265_v16  ;;  %vm1750_vm1 = vcmp.eq.s32.totalorder %v829_v46, 1 }
 0x267   : > { %1163 = vmatprep.subr.bf16.mxu1 %v1266_v0 }
 0x269   : > { %1132 = vmatpush3.bf16.msra.mxu0 %v534_v17 }
 0x26a   : > { %1133 = vmatprep.subr.bf16.mxu0 %v535_v18  ;;  %1164 = vmatpush3.bf16.msra.mxu1 %v1266_v0 }
 0x26b   : > { %1165 = vmatprep.subr.bf16.mxu1 %v1267_v19 }
 0x26d   : > { %1134 = vmatpush3.bf16.msra.mxu0 %v535_v18 }
 0x26e   : > { %1135 = vmatprep.subr.bf16.mxu0 %v536_v20  ;;  %1166 = vmatpush3.bf16.msra.mxu1 %v1267_v19 }
 0x26f   : > { %1167 = vmatprep.subr.bf16.mxu1 %v1268_v21 }
 0x271   : > { %1136 = vmatpush3.bf16.msra.mxu0 %v536_v20 }
 0x272   : > { %1137 = vmatprep.subr.bf16.mxu0 %v537_v22  ;;  %1168 = vmatpush3.bf16.msra.mxu1 %v1268_v21 }
 0x273   : > { %1169 = vmatprep.subr.bf16.mxu1 %v1269_v23 }
 0x275   : > { %1138 = vmatpush3.bf16.msra.mxu0 %v537_v22 }
 0x276   : > { %1139 = vmatprep.subr.bf16.mxu0 %v538_v24  ;;  %1170 = vmatpush3.bf16.msra.mxu1 %v1269_v23 }
 0x277   : > { %1171 = vmatprep.subr.bf16.mxu1 %v1270_v25 }
 0x279   : > { %1140 = vmatpush3.bf16.msra.mxu0 %v538_v24 }
 0x27a   : > { %1172 = vmatpush3.bf16.msra.mxu1 %v1270_v25 }
 0x27c   : > { %1142 = vmatmul.mubr.bf16.vlgmr.msra.gmra.mrb[0].mxu0 %v1637_v1 }
 0x27d   : > { %1145 = vmatprep.mubr.bf16.mxu0 %v1639_v2 }
 0x284   : > { %1146 = vmatmul.mubr.bf16.gmra.mrb[4].mxu0 %v1641_v3 }
 0x285   : > { %1149 = vmatprep.mubr.bf16.mxu0 %v1643_v4 }
 0x28c   : > { %1150 = vmatmul.mubr.bf16.gmra.mrb[8].mxu0 %v1645_v5 }
 0x28d   : > { %1153 = vmatprep.mubr.bf16.mxu0 %v1647_v6 }
 0x294   : > { %1154 = vmatmul.mubr.bf16.gmra.mrb[12].mxu0 %v1649_v7 }
 0x34f   : > { %v1143_v26 = vpop.f32.mrb[0].mxu0 }
 0x350   : > { %v573_v27 = vpop.f32.mrb[1].mxu0 }
 0x351   : > { %v1144_v28 = vpop.f32.mrb[2].mxu0 }
 0x352   : > { %v637_v29 = vpack.c.bf16 %v1144_v28, %v1143_v26  ;;  %v576_v1 = vpop.f32.mrb[3].mxu0 }
 0x353   : > { %v636_v30 = vpack.c.bf16 %v576_v1, %v573_v27 }
 0x355   : > { %1173 = vmatprep.mubr.bf16.mxu1 %v636_v30 }
 0x356   : > { %1174 = vmatmul.mubr.bf16.vlgmr.msra.gmra.mrb[0].mxu1 %v637_v29 }
 0x357   : > { %v1147_v2 = vpop.f32.mrb[4].mxu0 }
 0x358   : > { %v589_v3 = vpop.f32.mrb[5].mxu0 }
 0x359   : > { %v1148_v4 = vpop.f32.mrb[6].mxu0 }
 0x35a   : > { %v639_v31 = vpack.c.bf16 %v1148_v4, %v1147_v2  ;;  %v592_v5 = vpop.f32.mrb[7].mxu0 }
 0x35b   : > { %v638_v32 = vpack.c.bf16 %v592_v5, %v589_v3 }
 0x35d   : > { %1177 = vmatprep.mubr.bf16.mxu1 %v638_v32 }
 0x35e   : > { %1178 = vmatmul.mubr.bf16.gmra.mrb[4].mxu1 %v639_v31 }
 0x35f   : > { %v1151_v6 = vpop.f32.mrb[8].mxu0 }
 0x360   : > { %v605_v7 = vpop.f32.mrb[9].mxu0 }
 0x361   : > { %v1152_v33 = vpop.f32.mrb[10].mxu0 }
 0x362   : > { %v641_v34 = vpack.c.bf16 %v1152_v33, %v1151_v6  ;;  %v608_v35 = vpop.f32.mrb[11].mxu0 }
 0x363   : > { %v640_v36 = vpack.c.bf16 %v608_v35, %v605_v7 }
 0x365   : > { %1181 = vmatprep.mubr.bf16.mxu1 %v640_v36 }
 0x366   : > { %1182 = vmatmul.mubr.bf16.gmra.mrb[8].mxu1 %v641_v34 }
 0x367   : > { %v1155_v37 = vpop.f32.mrb[12].mxu0 }
 0x368   : > { %v621_v38 = vpop.f32.mrb[13].mxu0 }
 0x369   : > { %v1156_v39 = vpop.f32.mrb[14].mxu0 }
 0x36a   : > { %v643_v40 = vpack.c.bf16 %v1156_v39, %v1155_v37  ;;  %v624_v41 = vpop.f32.mrb[15].mxu0 }
 0x36b   : > { %v642_v42 = vpack.c.bf16 %v624_v41, %v621_v38 }
 0x36d   : > { %1185 = vmatprep.mubr.bf16.mxu1 %v642_v42 }
 0x36e   : > { %1186 = vmatmul.mubr.bf16.gmra.mrb[12].mxu1 %v643_v40 }
 0x429   : > { %v1175_v44 = vpop.f32.mrb[0].mxu1 }
 0x42a   : > { %v758_v45 = vadd.f32 %v1175_v44, %v1745_v43  ;;  %v749_v47 = vpop.f32.mrb[1].mxu1 }
 0x42b   : > { %v750_v49 = vadd.f32 %v1745_v43, %v749_v47  ;;  %v1176_v50 = vpop.f32.mrb[2].mxu1 }
 0x42c   : > { %v814_v51 = vmax.f32 %v758_v45, 0.0  ;;  %v761_v52 = vadd.f32 %v1176_v50, %v1745_v43  ;;  %v752_v53 = vpop.f32.mrb[3].mxu1 }
 0x42d   : > { %v812_v55 = vmax.f32 %v750_v49, 0.0  ;;  %v753_v56 = vadd.f32 %v1745_v43, %v752_v53 }
 0x42e   : > { %v815_v57 = vmax.f32 %v761_v52, 0.0  ;;  %v833_v60 = vsel %vm1750_vm1, %v814_v51, %v758_v45 }
 0x42f   : > { %v813_v59 = vmax.f32 %v753_v56, 0.0  ;;  %v831_v62 = vsel %vm1750_vm1, %v812_v55, %v750_v49 }
 0x430   : > { %v834_v61 = vsel %vm1750_vm1, %v815_v57, %v761_v52 }
 0x431   : > { %v848_v63 = vpack.c.bf16 %v834_v61, %v833_v60  ;;  %v832_v8 = vsel %vm1750_vm1, %v813_v59, %v753_v56  ;;  %v1179_v9 = vpop.f32.mrb[4].mxu1 }
 0x432   : > { %v847_v10 = vpack.c.bf16 %v832_v8, %v831_v62  ;;  %v774_v11 = vadd.f32 %v1179_v9, %v1745_v43  ;;  %v765_v12 = vpop.f32.mrb[5].mxu1 }
 0x433   : > { %858 = vst [vmem:[#allocation3 + $0x8] sm:$0xff] %v848_v63  ;;  %v766_v48 = vadd.f32 %v1745_v43, %v765_v12  ;;  %v1180_v13 = vpop.f32.mrb[6].mxu1 }
 0x434   : > { %857 = vst [vmem:[#allocation3] sm:$0xff] %v847_v10  ;;  %v818_v14 = vmax.f32 %v774_v11, 0.0  ;;  %v777_v58 = vadd.f32 %v1180_v13, %v1745_v43  ;;  %v768_v15 = vpop.f32.mrb[7].mxu1 }
 0x435   : > { %v816_v16 = vmax.f32 %v766_v48, 0.0  ;;  %v769_v17 = vadd.f32 %v1745_v43, %v768_v15 }
 0x436   : > { %v819_v0 = vmax.f32 %v777_v58, 0.0  ;;  %v837_v19 = vsel %vm1750_vm1, %v818_v14, %v774_v11 }
 0x437   : > { %v817_v18 = vmax.f32 %v769_v17, 0.0  ;;  %v835_v21 = vsel %vm1750_vm1, %v816_v16, %v766_v48 }
 0x438   : > { %v838_v20 = vsel %vm1750_vm1, %v819_v0, %v777_v58 }
 0x439   : > { %v850_v22 = vpack.c.bf16 %v838_v20, %v837_v19  ;;  %v836_v23 = vsel %vm1750_vm1, %v817_v18, %v769_v17  ;;  %v1183_v24 = vpop.f32.mrb[8].mxu1 }
 0x43a   : > { %v849_v25 = vpack.c.bf16 %v836_v23, %v835_v21  ;;  %v790_v26 = vadd.f32 %v1183_v24, %v1745_v43  ;;  %v781_v27 = vpop.f32.mrb[9].mxu1 }
 0x43b   : > { %860 = vst [vmem:[#allocation3 + $0x18] sm:$0xff] %v850_v22  ;;  %v782_v28 = vadd.f32 %v1745_v43, %v781_v27  ;;  %v1184_v29 = vpop.f32.mrb[10].mxu1 }
 0x43c   : > { %859 = vst [vmem:[#allocation3 + $0x10] sm:$0xff] %v849_v25  ;;  %v822_v1 = vmax.f32 %v790_v26, 0.0  ;;  %v793_v30 = vadd.f32 %v1184_v29, %v1745_v43  ;;  %v784_v2 = vpop.f32.mrb[11].mxu1 }
 0x43d   : > { %v820_v3 = vmax.f32 %v782_v28, 0.0  ;;  %v785_v4 = vadd.f32 %v1745_v43, %v784_v2 }
 0x43e   : > { %v823_v31 = vmax.f32 %v793_v30, 0.0  ;;  %v841_v32 = vsel %vm1750_vm1, %v822_v1, %v790_v26 }
 0x43f   : > { %v821_v5 = vmax.f32 %v785_v4, 0.0  ;;  %v839_v7 = vsel %vm1750_vm1, %v820_v3, %v782_v28 }
 0x440   : > { %v842_v6 = vsel %vm1750_vm1, %v823_v31, %v793_v30 }
 0x441   : > { %v852_v33 = vpack.c.bf16 %v842_v6, %v841_v32  ;;  %v840_v34 = vsel %vm1750_vm1, %v821_v5, %v785_v4  ;;  %v1187_v35 = vpop.f32.mrb[12].mxu1 }
 0x442   : > { %v851_v36 = vpack.c.bf16 %v840_v34, %v839_v7  ;;  %v806_v37 = vadd.f32 %v1187_v35, %v1745_v43  ;;  %v797_v38 = vpop.f32.mrb[13].mxu1 }
 0x443   : > { %862 = vst [vmem:[#allocation3 + $0x28] sm:$0xff] %v852_v33  ;;  %v798_v39 = vadd.f32 %v1745_v43, %v797_v38  ;;  %v1188_v40 = vpop.f32.mrb[14].mxu1 }
 0x444   : > { %861 = vst [vmem:[#allocation3 + $0x20] sm:$0xff] %v851_v36  ;;  %v826_v41 = vmax.f32 %v806_v37, 0.0  ;;  %v809_v42 = vadd.f32 %v1188_v40, %v1745_v43  ;;  %v800_v44 = vpop.f32.mrb[15].mxu1 }
 0x445   : > { %v824_v45 = vmax.f32 %v798_v39, 0.0  ;;  %v801_v46 = vadd.f32 %v1745_v43, %v800_v44 }
 0x446   : > { %v827_v47 = vmax.f32 %v809_v42, 0.0  ;;  %v845_v50 = vsel %vm1750_vm1, %v826_v41, %v806_v37 }
 0x447   : > { %v825_v49 = vmax.f32 %v801_v46, 0.0  ;;  %v843_v52 = vsel %vm1750_vm1, %v824_v45, %v798_v39 }
 0x448   : > { %v846_v51 = vsel %vm1750_vm1, %v827_v47, %v809_v42 }
 0x449   : > { %v854_v53 = vpack.c.bf16 %v846_v51, %v845_v50  ;;  %v844_v55 = vsel %vm1750_vm1, %v825_v49, %v801_v46 }
 0x44a   : > { %v853_v56 = vpack.c.bf16 %v844_v55, %v843_v52 }
 0x44b   : > { %864 = vst [vmem:[#allocation3 + $0x38] sm:$0xff] %v854_v53 }
 0x44c   : > { %863 = vst [vmem:[#allocation3 + $0x30] sm:$0xff] %v853_v56 }
 0x44d PF: > { %p865_p9 = scmp.eq.s32.totalorder %s1433_s18, 4  ;;  %s1448_s23 = smov [#allocation4]  }
 0x44e   : > { %s878_s8 = sshll.u32 %s1448_s23, 4  ;;  %s879_s8 = int_to_ptr.vmem [resolvable:$true] %s878_s8 }
 0x44f   : > { %s1353_s12 = scalar_lea.vmem %s879_s8, 1024  ;;  %p1360_p8 = scmp.lt.s32.totalorder %s879_s8, %s879_s8 }
 0x450   : > { %p1354_p4 = scmp.ne.s32.totalorder %s879_s8, %s1353_s12  ;;  %p1361_p10 = scmp.lt.s32.totalorder %s1353_s12, %s1353_s12 }
 0x452   : > { %p1355_p5 = pnand %p1354_p4, %p865_p9  ;;  %p1362_p12 = por %p1361_p10, %p1360_p8 }
 0x454   : > { %p1356_p6 = pneg %p1355_p5 }
 0x456   : > { %p1363_p0 = pnand %p1362_p12, %p1356_p6 }
 0x458   : > { %1366 = shalt.err (!%p1363_p0)  }
 0x459   : > { %s1367_s11 = scalar_lea.hbm %s1844_s4, 1024 }
 0x45a   : > { %p1368_p1 = scmp.ne.s32.totalorder %s1844_s4, %s1367_s11  ;;  %p1373_p7 = scmp.lt.u32.totalorder %s1367_s11, %s1844_s4 }
 0x45c   : > { %p1369_p2 = pnand %p1368_p1, %p865_p9 }
 0x45e   : > { %p1370_p11 = pneg %p1369_p2 }
 0x460   : > { %p1375_p13 = pnand %p1373_p7, %p1370_p11 }
 0x462   : > { %1378 = shalt.err (!%p1375_p13)  }
 0x463   : > { %1195 = dma.vmem_to_hbm [thread:$0]  (%p865_p9), %s879_s8, 1024, %s1844_s4, [#allocation5 + $0x2] }
 0x464   : > { %1416 = dma.done.wait (%p865_p9), [#allocation5 + $0x2], 1024 }
 0x465   : > { %1418 = vsyncadd (%p865_p9), [#allocation5 + $0x2], 4294966272 }
 0x466 PF: > { %s17_s20 = sadd.s32 1, %s1441_s20   ;;  %s1852_s15 = smov %s1425_s16 }
 0x467   : > { %p14_p3 = scmp.ge.s32.totalorder %s17_s20, 6   ;;  %s1853_s16 = smov %s1429_s17 }
 0x468   : > { %s1854_s17 = smov %s1523_s27  ;;  %s1855_s18 = smov %s1437_s19 }
 0x469   : > { %s1856_s19 = smov %s1858_s22  ;;  %16 = sbr.rel (!%p14_p3) target bundleno = 4 (0x4), region = 90 }
 0x470   :  { %886 = vsyncpa [#allocation7], 1 }
 0x471   :  { %888 = vsyncpa [#allocation7 + $0x1], 1 }
 0x472   :  { %889 = vsyncmov [#allocation5] }
 0x475   :  { %s890_s28 = vpop.sfrf %889 }
 0x476   :  { %p991_p9 = scmp.ne.s32.totalorder %s890_s28, 0 }
 0x478   :  { %894 = shalt.err (%p991_p9)  }
 0x479   :  { %896 = vsyncmov [#allocation5 + $0x1] }
 0x47c   :  { %s897_s29 = vpop.sfrf %896 }
 0x47d   :  { %p992_p4 = scmp.ne.s32.totalorder %s897_s29, 0 }
 0x47f   :  { %901 = shalt.err (%p992_p4)  }
 0x480   :  { %903 = vsyncmov [#allocation5 + $0x2] }
 0x483   :  { %s904_s30 = vpop.sfrf %903 }
 0x484   :  { %p993_p5 = scmp.ne.s32.totalorder %s904_s30, 0 }
 0x486   :  { %908 = shalt.err (%p993_p5)  }

</bundles_post_ra>
